<compile_context>
chip_gen: v5e
topology: v5e:2x2
jax: 0.10.0
libtpu: 0.0.40
codegen_flags: <defaults>
</compile_context>

<pallas_src>
import math
from functools import partial

import numpy as np
import jax
import jax.numpy as jnp
from jax import lax
from jax.experimental import pallas as pl
from jax.experimental.pallas import tpu as pltpu

LRELU_SLOPE = 0.2
IN_EPS = 1e-5        # nn.InstanceNorm2d default eps
RGB_PAD = 128        # lane-dense to_rgb output width (real channels = 3)


def _leaky(v):
    return jnp.where(v > 0, v, LRELU_SLOPE * v)


def _nbytes(a):
    return int(a.size) * a.dtype.itemsize


def _const_spec(shape):
    zeros = (0,) * len(shape)
    return pl.BlockSpec(shape, lambda b, _z=zeros: _z)


# ---------------------------------------------------------------------------
# Prologue kernel: 8-layer style MLP + both AdaIN style projections for the
# whole (padded) batch in one shot.  Output rows are [g1 | b1 | g2 | b2].
# ---------------------------------------------------------------------------
def _style_kernel(lat_ref, mlp_w_ref, mlp_b_ref, ad_w_ref, ad_b_ref, st_ref,
                  *, n_mlp):
    s = lat_ref[...]                                        # (Bp, D) f32
    for i in range(n_mlp):                                  # unrolled
        w = mlp_w_ref[i].astype(jnp.float32)                # bf16 -> f32
        s = _leaky(jnp.dot(s, w, preferred_element_type=jnp.float32)
                   + mlp_b_ref[i])
    # Both AdaIN projections fused: (Bp, D) @ (D, 4C).  NOTE: the PyTorch
    # module sets BOTH bias halves (gamma and beta) to 1 — ad_b matches.
    st_ref[...] = (jnp.dot(s, ad_w_ref[...].astype(jnp.float32),
                           preferred_element_type=jnp.float32)
                   + ad_b_ref[...])


# ---------------------------------------------------------------------------
# Synthesis kernel: one grid step == BT batch samples.
# ---------------------------------------------------------------------------
def _synth_kernel(st_ref, noise_ref, const_ref, mask_ref, n1_ref, n2_ref,
                  conv_w_ref, rgb_w_ref, rgb_b_ref, o_ref,
                  *, C, BT, HW, shifts):
    st = st_ref[...]                                        # (BT, 4C)
    g1 = st[:, 0 * C:1 * C][:, None, :]                     # (BT, 1, C)
    b1 = st[:, 1 * C:2 * C][:, None, :]
    g2 = st[:, 2 * C:3 * C][:, None, :]
    b2 = st[:, 3 * C:4 * C][:, None, :]
    nz = noise_ref[...]                                     # (BT, HW, 1)

    # ---- conv1 == ConstantInput; AdaIN1 (const pre-normalized on host, so
    # no in-kernel reduction / rsqrt); NoiseInjection1; LeakyReLU.
    x3 = g1 * const_ref[...][None, :, :] + b1               # (BT, HW, C)
    x3 = x3 + n1_ref[...] * nz
    x3 = _leaky(x3)
    x = x3.reshape(BT * HW, C)

    # ---- conv2: EqualConv2d(C, C, 3, padding=1) as 9 accumulating
    # (BT*HW, C) @ (C, C) MXU dots.  Taps built with pltpu.roll on the
    # flattened row axis + precomputed masks (masks also zero the rows that
    # would wrap across sample boundaries).  Conv bias is dropped: a
    # per-channel constant is exactly cancelled by AdaIN2's mean subtraction.
    acc = None
    for k, sh in enumerate(shifts):                         # unrolled
        xk = x if sh == 0 else pltpu.roll(x, sh, 0)
        xk = mask_ref[k] * xk
        d = jnp.dot(xk, conv_w_ref[k].astype(jnp.float32),
                    preferred_element_type=jnp.float32)
        acc = d if acc is None else acc + d

    # ---- AdaIN2 (per-sample instance norm); NoiseInjection2; LeakyReLU.
    y3 = acc.reshape(BT, HW, C)
    m = jnp.mean(y3, axis=1, keepdims=True)
    dlt = y3 - m
    v = jnp.mean(dlt * dlt, axis=1, keepdims=True)
    y3 = g2 * (dlt * lax.rsqrt(v + IN_EPS)) + b2            # EUP rsqrt
    y3 = y3 + n2_ref[...] * nz
    y3 = _leaky(y3)

    # ---- to_rgb: EqualConv2d(C, 3, 1); channels zero-padded to 128 so the
    # store is lane-dense (unmasked vst); wrapper slices [:, :3].
    rgb = (jnp.dot(y3.reshape(BT * HW, C),
                   rgb_w_ref[...].astype(jnp.float32),
                   preferred_element_type=jnp.float32) + rgb_b_ref[...])
    o_ref[...] = rgb.reshape(BT, HW, RGB_PAD)


# ---------------------------------------------------------------------------
# Top-level forward (step=0, alpha=-1 path of StyledGenerator.forward)
# ---------------------------------------------------------------------------
def styled_generator_forward(latent, noise_nchw, params, H, W):
    # TODO(synk): progressive-growth path (step > 0: nearest upsample, later
    # StyledConvBlocks and the alpha skip-RGB blend) is not implemented.
    B, D = latent.shape
    HW = H * W
    C = params['const_norm'].shape[1]
    n_mlp = params['mlp_w'].shape[0]
    BT = params['bt']                           # samples per grid step

    # Pad the batch to a BT multiple (zero latents/noise are numerically
    # harmless through the whole pipeline); sliced back at the end.
    Bp = ((B + BT - 1) // BT) * BT
    if Bp != B:
        latent = jnp.concatenate(
            [latent, jnp.zeros((Bp - B, D), latent.dtype)], axis=0)
        noise_nchw = jnp.concatenate(
            [noise_nchw, jnp.zeros((Bp - B, 1, H, W), noise_nchw.dtype)], axis=0)
    noise3 = noise_nchw[:, 0].reshape(Bp, HW, 1)

    # ---- prologue: style MLP + AdaIN projections for the whole batch -------
    style_flops = Bp * (2 * n_mlp * D * D + 2 * D * 4 * C)
    style_bytes = sum(_nbytes(a) for a in
                      (latent, params['mlp_w'], params['mlp_b'],
                       params['ad_w'], params['ad_b'])) + Bp * 4 * C * 4
    st = pl.pallas_call(
        partial(_style_kernel, n_mlp=n_mlp),
        out_shape=jax.ShapeDtypeStruct((Bp, 4 * C), jnp.float32),
        grid_spec=pltpu.PrefetchScalarGridSpec(
            num_scalar_prefetch=0, grid=(1,),
            in_specs=[_const_spec((Bp, D)),
                      _const_spec(params['mlp_w'].shape),
                      _const_spec(params['mlp_b'].shape),
                      _const_spec(params['ad_w'].shape),
                      _const_spec(params['ad_b'].shape)],
            out_specs=_const_spec((Bp, 4 * C))),
        compiler_params=pltpu.CompilerParams(
            dimension_semantics=("arbitrary",),
            vmem_limit_bytes=48 * 1024 * 1024),
        cost_estimate=pl.CostEstimate(flops=int(style_flops),
                                      transcendentals=0,
                                      bytes_accessed=int(style_bytes)),
    )(latent, params['mlp_w'], params['mlp_b'], params['ad_w'], params['ad_b'])

    # ---- synthesis: BT samples per grid step --------------------------------
    synth_flops = Bp * HW * (2 * 9 * C * C + 2 * C * RGB_PAD)
    synth_bytes = (_nbytes(st) + _nbytes(noise3)
                   + sum(_nbytes(params[k]) for k in
                         ('const_norm', 'mask', 'n1_w', 'n2_w',
                          'conv_w', 'rgb_w', 'rgb_b'))
                   + Bp * HW * RGB_PAD * 4)

    in_specs = [
        pl.BlockSpec((BT, 4 * C), lambda b: (b, 0)),        # style (Bp, 4C)
        pl.BlockSpec((BT, HW, 1), lambda b: (b, 0, 0)),     # noise (Bp, HW, 1)
        _const_spec(params['const_norm'].shape),            # (HW, C)
        _const_spec(params['mask'].shape),                  # (9, BT*HW, 1)
        _const_spec(params['n1_w'].shape),                  # (1, C)
        _const_spec(params['n2_w'].shape),                  # (1, C)
        _const_spec(params['conv_w'].shape),                # (9, C, C) bf16
        _const_spec(params['rgb_w'].shape),                 # (C, 128) bf16
        _const_spec(params['rgb_b'].shape),                 # (1, 128)
    ]
    out_specs = pl.BlockSpec((BT, HW, RGB_PAD), lambda b: (b, 0, 0))

    out = pl.pallas_call(
        partial(_synth_kernel, C=C, BT=BT, HW=HW, shifts=params['shifts']),
        out_shape=jax.ShapeDtypeStruct((Bp, HW, RGB_PAD), jnp.float32),
        grid_spec=pltpu.PrefetchScalarGridSpec(
            num_scalar_prefetch=0, grid=(Bp // BT,),
            in_specs=in_specs, out_specs=out_specs),
        compiler_params=pltpu.CompilerParams(
            # Resident weights are ~2.5 MiB bf16 at prod scale after hoisting
            # the MLP, so megacore sharding is cheap even on v7x.
            dimension_semantics=("parallel",),
            vmem_limit_bytes=48 * 1024 * 1024),
        cost_estimate=pl.CostEstimate(flops=int(synth_flops),
                                      transcendentals=int(Bp * C),
                                      bytes_accessed=int(synth_bytes)),
    )(st, noise3, params['const_norm'], params['mask'],
      params['n1_w'], params['n2_w'], params['conv_w'],
      params['rgb_w'], params['rgb_b'])

    # (Bp, HW, 128) -> (B, 3, H, W), matching PyTorch NCHW.
    return out[:B, :, :3].reshape(B, H, W, 3).transpose(0, 3, 1, 2)


# ---------------------------------------------------------------------------
# Conv tap shifts (flattened BT*HW rolls) + border masks, precomputed on host.
# Shifts are modulo BT*HW; the masks kill both out-of-image taps and the
# rows that would otherwise wrap into the neighbouring sample.
# ---------------------------------------------------------------------------
def make_conv_taps(H, W, BT, ksize=3, pad=1):
    HW = H * W
    n_rows = BT * HW
    masks = np.zeros((ksize * ksize, HW, 1), np.float32)
    shifts = []
    for kh in range(ksize):
        for kw in range(ksize):
            k = kh * ksize + kw
            off = (kh - pad) * W + (kw - pad)
            shifts.append((-off) % n_rows)   # rolled[p] reads row p + off
            for oh in range(H):
                for ow in range(W):
                    ih, iw = oh + kh - pad, ow + kw - pad
                    if 0 <= ih < H and 0 <= iw < W:
                        masks[k, oh * W + ow, 0] = 1.0
    masks_tiled = np.tile(masks, (1, BT, 1))                # (9, BT*HW, 1)
    return jnp.asarray(masks_tiled), tuple(shifts)


# ---------------------------------------------------------------------------
# Deterministic parameter setup (matches the PyTorch __init__ + EqualLR math).
# Heavy weights stored bf16; the reference uses the same bf16-rounded values.
# ---------------------------------------------------------------------------
def init_params(key, D, C, H, W, n_mlp, BT):
    HW = H * W
    ks = jax.random.split(key, 8)
    lin_scale = math.sqrt(2.0 / D)            # EqualLR: fan_in = in_dim
    conv3_scale = math.sqrt(2.0 / (C * 9))    # fan_in = in_ch * k * k
    conv1_scale = math.sqrt(2.0 / C)          # 1x1 conv / NoiseInjection

    # style MLP: torch Linear weight (out, in) ~ N(0,1), bias 0.
    mlp_w_oi = jax.random.normal(ks[0], (n_mlp, D, D), jnp.float32)
    mlp_w = (jnp.transpose(mlp_w_oi, (0, 2, 1)) * lin_scale).astype(jnp.bfloat16)
    mlp_b = jnp.zeros((n_mlp, 1, D), jnp.float32)

    # ConstantInput: (1, C, H, W) ~ randn -> (HW, C); its instance norm is
    # sample-independent, so precompute it here (biased var, eps 1e-5).
    const_nchw = jax.random.normal(ks[1], (1, C, H, W), jnp.float32)
    const = const_nchw[0].transpose(1, 2, 0).reshape(HW, C)
    cm = const.mean(axis=0, keepdims=True)
    cd = const - cm
    cv = (cd * cd).mean(axis=0, keepdims=True)
    const_norm = cd / jnp.sqrt(cv + IN_EPS)

    # AdaIN style linears (both blocks fused along the output axis); both the
    # gamma- and beta-halves of the bias are 1 (matches the module).
    ad1_w = jnp.transpose(jax.random.normal(ks[2], (2 * C, D), jnp.float32)) * lin_scale
    ad2_w = jnp.transpose(jax.random.normal(ks[3], (2 * C, D), jnp.float32)) * lin_scale
    ad_w = jnp.concatenate([ad1_w, ad2_w], axis=1).astype(jnp.bfloat16)  # (D, 4C)
    ad_b = jnp.ones((1, 4 * C), jnp.float32)

    # NoiseInjection (equal_lr'd): PyTorch inits these to zero; use nonzero
    # values here so the noise path is actually exercised by the check.
    n1_w = jax.random.normal(ks[4], (1, C), jnp.float32) * conv1_scale
    n2_w = jax.random.normal(ks[5], (1, C), jnp.float32) * conv1_scale

    # conv2: EqualConv2d(C, C, 3, padding=1) — weight ~ N(0,1) * scale.
    # Bias (zero in the module; would cancel under AdaIN2 anyway) is dropped.
    conv_w_oihw = jax.random.normal(ks[6], (C, C, 3, 3), jnp.float32) * conv3_scale
    conv_w = (jnp.transpose(conv_w_oihw, (2, 3, 1, 0))
              .reshape(9, C, C).astype(jnp.bfloat16))       # (tap, in, out)

    # to_rgb: EqualConv2d(C, 3, 1) — channels zero-padded 3 -> 128 for
    # lane-dense stores (wrapper slices back to 3).
    rgb_w_oihw = jax.random.normal(ks[7], (3, C, 1, 1), jnp.float32) * conv1_scale
    rgb_w = (jnp.zeros((C, RGB_PAD), jnp.float32)
             .at[:, :3].set(rgb_w_oihw[:, :, 0, 0].T).astype(jnp.bfloat16))
    rgb_b = jnp.zeros((1, RGB_PAD), jnp.float32)

    mask, shifts = make_conv_taps(H, W, BT)

    params = dict(mlp_w=mlp_w, mlp_b=mlp_b, const_norm=const_norm, mask=mask,
                  shifts=shifts, bt=BT, ad_w=ad_w, ad_b=ad_b,
                  n1_w=n1_w, n2_w=n2_w, conv_w=conv_w,
                  rgb_w=rgb_w, rgb_b=rgb_b)

    # Reference uses the bf16-rounded weights cast back to f32, reshaped to
    # the PyTorch layouts.
    mlp_w_ref = mlp_w.astype(jnp.float32)
    ad_w_ref = ad_w.astype(jnp.float32)
    conv_w_ref_oihw = (conv_w.astype(jnp.float32)
                       .reshape(3, 3, C, C).transpose(3, 2, 0, 1))
    rgb_w_ref_oihw = rgb_w.astype(jnp.float32)[:, :3].T.reshape(3, C, 1, 1)
    ref_params = dict(mlp_w=mlp_w_ref, mlp_b=mlp_b, const_nchw=const_nchw,
                      ad1_w=ad_w_ref[:, :2 * C], ad2_w=ad_w_ref[:, 2 * C:],
                      n1_w=n1_w, n2_w=n2_w,
                      conv_w_oihw=conv_w_ref_oihw, rgb_w_oihw=rgb_w_ref_oihw)
    return params, ref_params


# ---------------------------------------------------------------------------
# Pure-JAX reference (NCHW, lax.conv), mirroring the PyTorch module order:
# conv -> AdaIN -> NoiseInjection -> LeakyReLU (per StyledConvBlock.forward).
# ---------------------------------------------------------------------------
def reference_forward(latent, noise_nchw, rp, C, H, W):
    B = latent.shape[0]
    hi = lax.Precision.HIGHEST

    s = latent
    for i in range(rp['mlp_w'].shape[0]):
        s = _leaky(jnp.dot(s, rp['mlp_w'][i], precision=hi) + rp['mlp_b'][i, 0])

    def adain(x, w):
        st = jnp.dot(s, w, precision=hi) + 1.0     # both bias halves are 1
        gamma = st[:, :C][:, :, None, None]
        beta = st[:, C:][:, :, None, None]
        mean = x.mean(axis=(2, 3), keepdims=True)
        var = ((x - mean) ** 2).mean(axis=(2, 3), keepdims=True)
        return gamma * (x - mean) / jnp.sqrt(var + IN_EPS) + beta

    x = jnp.broadcast_to(rp['const_nchw'], (B, C, H, W))
    x = adain(x, rp['ad1_w'])
    x = x + rp['n1_w'].reshape(1, C, 1, 1) * noise_nchw
    x = _leaky(x)
    x = lax.conv_general_dilated(x, rp['conv_w_oihw'], (1, 1), 'SAME',
                                 dimension_numbers=('NCHW', 'OIHW', 'NCHW'),
                                 precision=hi)
    x = adain(x, rp['ad2_w'])
    x = x + rp['n2_w'].reshape(1, C, 1, 1) * noise_nchw
    x = _leaky(x)
    rgb = lax.conv_general_dilated(x, rp['rgb_w_oihw'], (1, 1), 'SAME',
                                   dimension_numbers=('NCHW', 'OIHW', 'NCHW'),
                                   precision=hi)
    return rgb


if __name__ == "__main__":
    # BT=8 -> BT*HW = 128 rows per conv matmul (full 128-row MXU pass on v5e,
    # half of a v6e/v7x 256-row pass); the B=2 test batch is zero-padded to 8.
    B, D, C, H, W, n_mlp, BT = 2, 32, 32, 4, 4, 8, 8

    key = jax.random.PRNGKey(0)
    k_par, k_lat, k_noise = jax.random.split(key, 3)
    params, ref_params = init_params(k_par, D, C, H, W, n_mlp, BT)

    latent = jax.random.normal(k_lat, (B, D), jnp.float32)          # `input`
    noise = jax.random.normal(k_noise, (B, 1, H, W), jnp.float32)   # noise[0]

    out = styled_generator_forward(latent, noise, params, H, W)
    out = jax.block_until_ready(out)
    assert out.shape == (B, 3, H, W), out.shape

    ref = reference_forward(latent, noise, ref_params, C, H, W)
    err = float(jnp.max(jnp.abs(out - ref)))
    # f32 activations end-to-end (bf16 is only weight *storage*); tolerance
    # allows for MXU f32 pass decomposition vs the XLA reference conv path.
    assert err < 5e-2, f"mismatch vs reference: max abs err {err}"

    print("KERNEL_OK")
</pallas_src>

<mosaic_0001>
module attributes {stable_mosaic.version = 11 : i64} {
  func.func @_style_kernel(%arg0: i32, %arg1: memref<8x32xf32, #tpu.memory_space<vmem>>, %arg2: memref<8x32x32xbf16, #tpu.memory_space<vmem>>, %arg3: memref<8x1x32xf32, #tpu.memory_space<vmem>>, %arg4: memref<32x128xbf16, #tpu.memory_space<vmem>>, %arg5: memref<1x128xf32, #tpu.memory_space<vmem>>, %arg6: memref<8x128xf32, #tpu.memory_space<vmem>>) attributes {dimension_semantics = [#tpu.dimension_semantics<arbitrary>], iteration_bounds = array<i64: 1>, scalar_prefetch = 0 : i64, scratch_operands = 0 : i64, tpu.core_type = #tpu.core_type<tc>, window_params = [{pipeline_mode = #tpu.pipeline_mode<synchronous>, transform_indices = @transform_0, window_bounds = array<i64: 8, 32>}, {pipeline_mode = #tpu.pipeline_mode<synchronous>, transform_indices = @transform_1, window_bounds = array<i64: 8, 32, 32>}, {pipeline_mode = #tpu.pipeline_mode<synchronous>, transform_indices = @transform_2, window_bounds = array<i64: 8, 1, 32>}, {pipeline_mode = #tpu.pipeline_mode<synchronous>, transform_indices = @transform_3, window_bounds = array<i64: 32, 128>}, {pipeline_mode = #tpu.pipeline_mode<synchronous>, transform_indices = @transform_4, window_bounds = array<i64: 1, 128>}, {pipeline_mode = #tpu.pipeline_mode<synchronous>, transform_indices = @transform_5, window_bounds = array<i64: 8, 128>}]} {
    %c0 = arith.constant 0 : index
    %c0_0 = arith.constant 0 : index
    %0 = vector.load %arg1[%c0, %c0_0] : memref<8x32xf32, #tpu.memory_space<vmem>>, vector<8x32xf32>
    %c0_1 = arith.constant 0 : index
    %c0_2 = arith.constant 0 : index
    %c0_3 = arith.constant 0 : index
    %1 = vector.load %arg2[%c0_1, %c0_2, %c0_3] : memref<8x32x32xbf16, #tpu.memory_space<vmem>>, vector<1x32x32xbf16>
    %2 = vector.shape_cast %1 : vector<1x32x32xbf16> to vector<32x32xbf16>
    %3 = arith.extf %2 : vector<32x32xbf16> to vector<32x32xf32>
    %cst = arith.constant dense<0.000000e+00> : vector<8x32xf32>
    %4 = tpu.matmul %0, %3, %cst {dimension_numbers = #tpu.dot_dimension_numbers<[1], [0], [0], [1], [0, 0, 1, 1], [], []>} : vector<8x32xf32>, vector<32x32xf32>, vector<8x32xf32> -> vector<8x32xf32>
    %c0_4 = arith.constant 0 : index
    %c0_5 = arith.constant 0 : index
    %c0_6 = arith.constant 0 : index
    %5 = vector.load %arg3[%c0_4, %c0_5, %c0_6] : memref<8x1x32xf32, #tpu.memory_space<vmem>>, vector<1x1x32xf32>
    %6 = vector.shape_cast %5 : vector<1x1x32xf32> to vector<1x32xf32>
    %7 = vector.broadcast %6 : vector<1x32xf32> to vector<8x32xf32>
    %8 = arith.addf %4, %7 : vector<8x32xf32>
    %cst_7 = arith.constant 0.000000e+00 : f32
    %9 = vector.broadcast %cst_7 : f32 to vector<8x32xf32>
    %10 = arith.cmpf ogt, %8, %9 : vector<8x32xf32>
    %cst_8 = arith.constant 2.000000e-01 : f32
    %11 = vector.broadcast %cst_8 : f32 to vector<8x32xf32>
    %12 = arith.mulf %11, %8 : vector<8x32xf32>
    %13 = arith.select %10, %8, %12 : vector<8x32xi1>, vector<8x32xf32>
    %c1 = arith.constant 1 : index
    %c0_9 = arith.constant 0 : index
    %c0_10 = arith.constant 0 : index
    %14 = vector.load %arg2[%c1, %c0_9, %c0_10] : memref<8x32x32xbf16, #tpu.memory_space<vmem>>, vector<1x32x32xbf16>
    %15 = vector.shape_cast %14 : vector<1x32x32xbf16> to vector<32x32xbf16>
    %16 = arith.extf %15 : vector<32x32xbf16> to vector<32x32xf32>
    %cst_11 = arith.constant dense<0.000000e+00> : vector<8x32xf32>
    %17 = tpu.matmul %13, %16, %cst_11 {dimension_numbers = #tpu.dot_dimension_numbers<[1], [0], [0], [1], [0, 0, 1, 1], [], []>} : vector<8x32xf32>, vector<32x32xf32>, vector<8x32xf32> -> vector<8x32xf32>
    %c1_12 = arith.constant 1 : index
    %c0_13 = arith.constant 0 : index
    %c0_14 = arith.constant 0 : index
    %18 = vector.load %arg3[%c1_12, %c0_13, %c0_14] : memref<8x1x32xf32, #tpu.memory_space<vmem>>, vector<1x1x32xf32>
    %19 = vector.shape_cast %18 : vector<1x1x32xf32> to vector<1x32xf32>
    %20 = vector.broadcast %19 : vector<1x32xf32> to vector<8x32xf32>
    %21 = arith.addf %17, %20 : vector<8x32xf32>
    %cst_15 = arith.constant 0.000000e+00 : f32
    %22 = vector.broadcast %cst_15 : f32 to vector<8x32xf32>
    %23 = arith.cmpf ogt, %21, %22 : vector<8x32xf32>
    %cst_16 = arith.constant 2.000000e-01 : f32
    %24 = vector.broadcast %cst_16 : f32 to vector<8x32xf32>
    %25 = arith.mulf %24, %21 : vector<8x32xf32>
    %26 = arith.select %23, %21, %25 : vector<8x32xi1>, vector<8x32xf32>
    %c2 = arith.constant 2 : index
    %c0_17 = arith.constant 0 : index
    %c0_18 = arith.constant 0 : index
    %27 = vector.load %arg2[%c2, %c0_17, %c0_18] : memref<8x32x32xbf16, #tpu.memory_space<vmem>>, vector<1x32x32xbf16>
    %28 = vector.shape_cast %27 : vector<1x32x32xbf16> to vector<32x32xbf16>
    %29 = arith.extf %28 : vector<32x32xbf16> to vector<32x32xf32>
    %cst_19 = arith.constant dense<0.000000e+00> : vector<8x32xf32>
    %30 = tpu.matmul %26, %29, %cst_19 {dimension_numbers = #tpu.dot_dimension_numbers<[1], [0], [0], [1], [0, 0, 1, 1], [], []>} : vector<8x32xf32>, vector<32x32xf32>, vector<8x32xf32> -> vector<8x32xf32>
    %c2_20 = arith.constant 2 : index
    %c0_21 = arith.constant 0 : index
    %c0_22 = arith.constant 0 : index
    %31 = vector.load %arg3[%c2_20, %c0_21, %c0_22] : memref<8x1x32xf32, #tpu.memory_space<vmem>>, vector<1x1x32xf32>
    %32 = vector.shape_cast %31 : vector<1x1x32xf32> to vector<1x32xf32>
    %33 = vector.broadcast %32 : vector<1x32xf32> to vector<8x32xf32>
    %34 = arith.addf %30, %33 : vector<8x32xf32>
    %cst_23 = arith.constant 0.000000e+00 : f32
    %35 = vector.broadcast %cst_23 : f32 to vector<8x32xf32>
    %36 = arith.cmpf ogt, %34, %35 : vector<8x32xf32>
    %cst_24 = arith.constant 2.000000e-01 : f32
    %37 = vector.broadcast %cst_24 : f32 to vector<8x32xf32>
    %38 = arith.mulf %37, %34 : vector<8x32xf32>
    %39 = arith.select %36, %34, %38 : vector<8x32xi1>, vector<8x32xf32>
    %c3 = arith.constant 3 : index
    %c0_25 = arith.constant 0 : index
    %c0_26 = arith.constant 0 : index
    %40 = vector.load %arg2[%c3, %c0_25, %c0_26] : memref<8x32x32xbf16, #tpu.memory_space<vmem>>, vector<1x32x32xbf16>
    %41 = vector.shape_cast %40 : vector<1x32x32xbf16> to vector<32x32xbf16>
    %42 = arith.extf %41 : vector<32x32xbf16> to vector<32x32xf32>
    %cst_27 = arith.constant dense<0.000000e+00> : vector<8x32xf32>
    %43 = tpu.matmul %39, %42, %cst_27 {dimension_numbers = #tpu.dot_dimension_numbers<[1], [0], [0], [1], [0, 0, 1, 1], [], []>} : vector<8x32xf32>, vector<32x32xf32>, vector<8x32xf32> -> vector<8x32xf32>
    %c3_28 = arith.constant 3 : index
    %c0_29 = arith.constant 0 : index
    %c0_30 = arith.constant 0 : index
    %44 = vector.load %arg3[%c3_28, %c0_29, %c0_30] : memref<8x1x32xf32, #tpu.memory_space<vmem>>, vector<1x1x32xf32>
    %45 = vector.shape_cast %44 : vector<1x1x32xf32> to vector<1x32xf32>
    %46 = vector.broadcast %45 : vector<1x32xf32> to vector<8x32xf32>
    %47 = arith.addf %43, %46 : vector<8x32xf32>
    %cst_31 = arith.constant 0.000000e+00 : f32
    %48 = vector.broadcast %cst_31 : f32 to vector<8x32xf32>
    %49 = arith.cmpf ogt, %47, %48 : vector<8x32xf32>
    %cst_32 = arith.constant 2.000000e-01 : f32
    %50 = vector.broadcast %cst_32 : f32 to vector<8x32xf32>
    %51 = arith.mulf %50, %47 : vector<8x32xf32>
    %52 = arith.select %49, %47, %51 : vector<8x32xi1>, vector<8x32xf32>
    %c4 = arith.constant 4 : index
    %c0_33 = arith.constant 0 : index
    %c0_34 = arith.constant 0 : index
    %53 = vector.load %arg2[%c4, %c0_33, %c0_34] : memref<8x32x32xbf16, #tpu.memory_space<vmem>>, vector<1x32x32xbf16>
    %54 = vector.shape_cast %53 : vector<1x32x32xbf16> to vector<32x32xbf16>
    %55 = arith.extf %54 : vector<32x32xbf16> to vector<32x32xf32>
    %cst_35 = arith.constant dense<0.000000e+00> : vector<8x32xf32>
    %56 = tpu.matmul %52, %55, %cst_35 {dimension_numbers = #tpu.dot_dimension_numbers<[1], [0], [0], [1], [0, 0, 1, 1], [], []>} : vector<8x32xf32>, vector<32x32xf32>, vector<8x32xf32> -> vector<8x32xf32>
    %c4_36 = arith.constant 4 : index
    %c0_37 = arith.constant 0 : index
    %c0_38 = arith.constant 0 : index
    %57 = vector.load %arg3[%c4_36, %c0_37, %c0_38] : memref<8x1x32xf32, #tpu.memory_space<vmem>>, vector<1x1x32xf32>
    %58 = vector.shape_cast %57 : vector<1x1x32xf32> to vector<1x32xf32>
    %59 = vector.broadcast %58 : vector<1x32xf32> to vector<8x32xf32>
    %60 = arith.addf %56, %59 : vector<8x32xf32>
    %cst_39 = arith.constant 0.000000e+00 : f32
    %61 = vector.broadcast %cst_39 : f32 to vector<8x32xf32>
    %62 = arith.cmpf ogt, %60, %61 : vector<8x32xf32>
    %cst_40 = arith.constant 2.000000e-01 : f32
    %63 = vector.broadcast %cst_40 : f32 to vector<8x32xf32>
    %64 = arith.mulf %63, %60 : vector<8x32xf32>
    %65 = arith.select %62, %60, %64 : vector<8x32xi1>, vector<8x32xf32>
    %c5 = arith.constant 5 : index
    %c0_41 = arith.constant 0 : index
    %c0_42 = arith.constant 0 : index
    %66 = vector.load %arg2[%c5, %c0_41, %c0_42] : memref<8x32x32xbf16, #tpu.memory_space<vmem>>, vector<1x32x32xbf16>
    %67 = vector.shape_cast %66 : vector<1x32x32xbf16> to vector<32x32xbf16>
    %68 = arith.extf %67 : vector<32x32xbf16> to vector<32x32xf32>
    %cst_43 = arith.constant dense<0.000000e+00> : vector<8x32xf32>
    %69 = tpu.matmul %65, %68, %cst_43 {dimension_numbers = #tpu.dot_dimension_numbers<[1], [0], [0], [1], [0, 0, 1, 1], [], []>} : vector<8x32xf32>, vector<32x32xf32>, vector<8x32xf32> -> vector<8x32xf32>
    %c5_44 = arith.constant 5 : index
    %c0_45 = arith.constant 0 : index
    %c0_46 = arith.constant 0 : index
    %70 = vector.load %arg3[%c5_44, %c0_45, %c0_46] : memref<8x1x32xf32, #tpu.memory_space<vmem>>, vector<1x1x32xf32>
    %71 = vector.shape_cast %70 : vector<1x1x32xf32> to vector<1x32xf32>
    %72 = vector.broadcast %71 : vector<1x32xf32> to vector<8x32xf32>
    %73 = arith.addf %69, %72 : vector<8x32xf32>
    %cst_47 = arith.constant 0.000000e+00 : f32
    %74 = vector.broadcast %cst_47 : f32 to vector<8x32xf32>
    %75 = arith.cmpf ogt, %73, %74 : vector<8x32xf32>
    %cst_48 = arith.constant 2.000000e-01 : f32
    %76 = vector.broadcast %cst_48 : f32 to vector<8x32xf32>
    %77 = arith.mulf %76, %73 : vector<8x32xf32>
    %78 = arith.select %75, %73, %77 : vector<8x32xi1>, vector<8x32xf32>
    %c6 = arith.constant 6 : index
    %c0_49 = arith.constant 0 : index
    %c0_50 = arith.constant 0 : index
    %79 = vector.load %arg2[%c6, %c0_49, %c0_50] : memref<8x32x32xbf16, #tpu.memory_space<vmem>>, vector<1x32x32xbf16>
    %80 = vector.shape_cast %79 : vector<1x32x32xbf16> to vector<32x32xbf16>
    %81 = arith.extf %80 : vector<32x32xbf16> to vector<32x32xf32>
    %cst_51 = arith.constant dense<0.000000e+00> : vector<8x32xf32>
    %82 = tpu.matmul %78, %81, %cst_51 {dimension_numbers = #tpu.dot_dimension_numbers<[1], [0], [0], [1], [0, 0, 1, 1], [], []>} : vector<8x32xf32>, vector<32x32xf32>, vector<8x32xf32> -> vector<8x32xf32>
    %c6_52 = arith.constant 6 : index
    %c0_53 = arith.constant 0 : index
    %c0_54 = arith.constant 0 : index
    %83 = vector.load %arg3[%c6_52, %c0_53, %c0_54] : memref<8x1x32xf32, #tpu.memory_space<vmem>>, vector<1x1x32xf32>
    %84 = vector.shape_cast %83 : vector<1x1x32xf32> to vector<1x32xf32>
    %85 = vector.broadcast %84 : vector<1x32xf32> to vector<8x32xf32>
    %86 = arith.addf %82, %85 : vector<8x32xf32>
    %cst_55 = arith.constant 0.000000e+00 : f32
    %87 = vector.broadcast %cst_55 : f32 to vector<8x32xf32>
    %88 = arith.cmpf ogt, %86, %87 : vector<8x32xf32>
    %cst_56 = arith.constant 2.000000e-01 : f32
    %89 = vector.broadcast %cst_56 : f32 to vector<8x32xf32>
    %90 = arith.mulf %89, %86 : vector<8x32xf32>
    %91 = arith.select %88, %86, %90 : vector<8x32xi1>, vector<8x32xf32>
    %c7 = arith.constant 7 : index
    %c0_57 = arith.constant 0 : index
    %c0_58 = arith.constant 0 : index
    %92 = vector.load %arg2[%c7, %c0_57, %c0_58] : memref<8x32x32xbf16, #tpu.memory_space<vmem>>, vector<1x32x32xbf16>
    %93 = vector.shape_cast %92 : vector<1x32x32xbf16> to vector<32x32xbf16>
    %94 = arith.extf %93 : vector<32x32xbf16> to vector<32x32xf32>
    %cst_59 = arith.constant dense<0.000000e+00> : vector<8x32xf32>
    %95 = tpu.matmul %91, %94, %cst_59 {dimension_numbers = #tpu.dot_dimension_numbers<[1], [0], [0], [1], [0, 0, 1, 1], [], []>} : vector<8x32xf32>, vector<32x32xf32>, vector<8x32xf32> -> vector<8x32xf32>
    %c7_60 = arith.constant 7 : index
    %c0_61 = arith.constant 0 : index
    %c0_62 = arith.constant 0 : index
    %96 = vector.load %arg3[%c7_60, %c0_61, %c0_62] : memref<8x1x32xf32, #tpu.memory_space<vmem>>, vector<1x1x32xf32>
    %97 = vector.shape_cast %96 : vector<1x1x32xf32> to vector<1x32xf32>
    %98 = vector.broadcast %97 : vector<1x32xf32> to vector<8x32xf32>
    %99 = arith.addf %95, %98 : vector<8x32xf32>
    %cst_63 = arith.constant 0.000000e+00 : f32
    %100 = vector.broadcast %cst_63 : f32 to vector<8x32xf32>
    %101 = arith.cmpf ogt, %99, %100 : vector<8x32xf32>
    %cst_64 = arith.constant 2.000000e-01 : f32
    %102 = vector.broadcast %cst_64 : f32 to vector<8x32xf32>
    %103 = arith.mulf %102, %99 : vector<8x32xf32>
    %104 = arith.select %101, %99, %103 : vector<8x32xi1>, vector<8x32xf32>
    %c0_65 = arith.constant 0 : index
    %c0_66 = arith.constant 0 : index
    %105 = vector.load %arg4[%c0_65, %c0_66] : memref<32x128xbf16, #tpu.memory_space<vmem>>, vector<32x128xbf16>
    %106 = arith.extf %105 : vector<32x128xbf16> to vector<32x128xf32>
    %cst_67 = arith.constant dense<0.000000e+00> : vector<8x128xf32>
    %107 = tpu.matmul %104, %106, %cst_67 {dimension_numbers = #tpu.dot_dimension_numbers<[1], [0], [0], [1], [0, 0, 1, 1], [], []>} : vector<8x32xf32>, vector<32x128xf32>, vector<8x128xf32> -> vector<8x128xf32>
    %c0_68 = arith.constant 0 : index
    %c0_69 = arith.constant 0 : index
    %108 = vector.load %arg5[%c0_68, %c0_69] : memref<1x128xf32, #tpu.memory_space<vmem>>, vector<1x128xf32>
    %109 = vector.broadcast %108 : vector<1x128xf32> to vector<8x128xf32>
    %110 = arith.addf %107, %109 : vector<8x128xf32>
    %c0_70 = arith.constant 0 : index
    %c0_71 = arith.constant 0 : index
    %111 = vector.load %arg6[%c0_70, %c0_71] : memref<8x128xf32, #tpu.memory_space<vmem>>, vector<8x128xf32>
    tpu.vector_store %arg6[%c0_70, %c0_71], %110 {strides = array<i32>} : memref<8x128xf32, #tpu.memory_space<vmem>>, vector<8x128xf32>,
    return
  }
  func.func @transform_0(%arg0: i32) -> (i32, i32) {
    %c0_i32 = arith.constant 0 : i32
    %c0_i32_0 = arith.constant 0 : i32
    %c0_i32_1 = arith.constant 0 : i32
    return %c0_i32, %c0_i32_0 : i32, i32
  }
  func.func @transform_1(%arg0: i32) -> (i32, i32, i32) {
    %c0_i32 = arith.constant 0 : i32
    %c0_i32_0 = arith.constant 0 : i32
    %c0_i32_1 = arith.constant 0 : i32
    %c0_i32_2 = arith.constant 0 : i32
    return %c0_i32, %c0_i32_0, %c0_i32_1 : i32, i32, i32
  }
  func.func @transform_2(%arg0: i32) -> (i32, i32, i32) {
    %c0_i32 = arith.constant 0 : i32
    %c0_i32_0 = arith.constant 0 : i32
    %c0_i32_1 = arith.constant 0 : i32
    %c0_i32_2 = arith.constant 0 : i32
    return %c0_i32, %c0_i32_0, %c0_i32_1 : i32, i32, i32
  }
  func.func @transform_3(%arg0: i32) -> (i32, i32) {
    %c0_i32 = arith.constant 0 : i32
    %c0_i32_0 = arith.constant 0 : i32
    %c0_i32_1 = arith.constant 0 : i32
    return %c0_i32, %c0_i32_0 : i32, i32
  }
  func.func @transform_4(%arg0: i32) -> (i32, i32) {
    %c0_i32 = arith.constant 0 : i32
    %c0_i32_0 = arith.constant 0 : i32
    %c0_i32_1 = arith.constant 0 : i32
    return %c0_i32, %c0_i32_0 : i32, i32
  }
  func.func @transform_5(%arg0: i32) -> (i32, i32) {
    %c0_i32 = arith.constant 0 : i32
    %c0_i32_0 = arith.constant 0 : i32
    %c0_i32_1 = arith.constant 0 : i32
    return %c0_i32, %c0_i32_0 : i32, i32
  }
}

</mosaic_0001>

<bundles_post_ra>
// kernel: tpu_custom_call.1
= control target key start
LH: loop header
LB: loop body
LE: loop exit
PB: predicated region body
PF: predicated region fallthrough
CT: control target
= control target key end

     0   :  { %10 = vsyncpa [#allocation3], 0  ;;  %s759_s0 = inlined_call_operand.hbm [shape: f32[8,32], index: 0, kind: input, shape index: {}]   ;;  %s760_s1 = inlined_call_operand.hbm [shape: bf16[8,32,32], index: 1, kind: input, shape index: {}]   ;;  %s761_s2 = inlined_call_operand.hbm [shape: f32[8,1,32], index: 2, kind: input, shape index: {}]   ;;  %s762_s3 = inlined_call_operand.hbm [shape: bf16[32,128], index: 3, kind: input, shape index: {}]   ;;  %s763_s4 = inlined_call_operand.vmem [shape: f32[1,128], index: 4, kind: input, shape index: {}]   ;;  %s764_s5 = inlined_call_operand.hbm [shape: f32[8,128], index: 5, kind: output, shape index: {}]  }
   0x1   :  { %11 = vsyncpa [#allocation6], 0 }
   0x2   :  { %12 = vsyncpa [#allocation9], 0  ;;  %s29_s20 = sshll.u32 %s760_s1, 4  ;;  %s30_s20 = int_to_ptr.hbm [resolvable:$true] %s29_s20 }
   0x3   :  { %13 = vsyncpa [#allocation4], 0  ;;  %s693_s21 = smov [#allocation5]   ;;  %s19_s25 = sshll.u32 %s759_s0, 4  ;;  %s20_s25 = int_to_ptr.hbm [resolvable:$true] %s19_s25 }
   0x4   :  { %s31_s22 = sshll.u32 %s693_s21, 4  ;;  %s694_s26 = smov 64   ;;  %s32_s22 = int_to_ptr.vmem [resolvable:$true] %s31_s22 }
   0x5   :  { %s695_s27 = smov 4   ;;  %s696_s28 = smov [#allocation2]  }
   0x6   :  { %37 = dma.hbm_to_vmem [thread:$0]  %s30_s20, 2048, %s32_s22, [#allocation6], %s694_s26, %s694_s26, %s695_s27  }
   0x7   :  { %s21_s29 = sshll.u32 %s696_s28, 4  ;;  %s42_s7 = sshll.u32 %s761_s2, 4  ;;  %s22_s29 = int_to_ptr.vmem [resolvable:$true] %s21_s29  ;;  %s43_s7 = int_to_ptr.hbm [resolvable:$true] %s42_s7 }
   0x8   :  { %24 = dma.hbm_to_vmem [thread:$0]  %s20_s25, 128, %s22_s29, [#allocation3]  }
   0x9   :  { %s697_s1 = smov [#allocation7]   ;;  %s55_s0 = sshll.u32 %s762_s3, 4  ;;  %s56_s0 = int_to_ptr.hbm [resolvable:$true] %s55_s0 }
   0xa   :  { %s44_s8 = sshll.u32 %s697_s1, 4  ;;  %s698_s11 = smov 16   ;;  %s45_s8 = int_to_ptr.vmem [resolvable:$true] %s44_s8 }
   0xb   :  { %s699_s12 = smov 1   ;;  %s700_s13 = smov [#allocation8]  }
   0xc   :  { %50 = dma.hbm_to_vmem [thread:$0]  %s43_s7, 128, %s45_s8, [#allocation6], %s698_s11, %s698_s11, %s699_s12  }
   0xd   :  { %s57_s14 = sshll.u32 %s700_s13, 4  ;;  %s58_s14 = int_to_ptr.vmem [resolvable:$true] %s57_s14 }
   0xe   :  { %63 = dma.hbm_to_vmem [thread:$0]  %s56_s0, 256, %s58_s14, [#allocation9], %s694_s26, %s694_s26, %s695_s27  }
   0xf   :  { %685 = dma.done.wait [#allocation3], 128  }
  0x10   :  { %686 = vsyncadd [#allocation3], 4294967168 }
  0x11   :  { %687 = dma.done.wait [#allocation6], 2176  }
  0x12   :  { %688 = vsyncadd [#allocation6], 4294965120 }
  0x13   :  { %689 = dma.done.wait [#allocation9], 256  }
  0x14   :  { %690 = vsyncadd [#allocation9], 4294967040  ;;  %v538_v0 = vld [vmem:[#allocation5 + $0x8] sm:$0xff]   ;;  %v467_v1 = vld [vmem:[#allocation5] sm:$0xff]   ;;  %vm95_vm0 = vcmask 261120   ;;  %s701_s15 = smov [#allocation10]  }
  0x15   :  { %v473_v2 = vunpack.c.h.bf16 %v538_v0  ;;  %v472_v3 = vunpack.c.l.bf16 %v538_v0  ;;  %v539_v4 = vld [vmem:[#allocation5 + $0x18] sm:$0xff]   ;;  %v469_v6 = vunpack.c.h.bf16 %v467_v1  ;;  %v468_v7 = vunpack.c.l.bf16 %v467_v1  ;;  %v475_v10 = vld [vmem:[#allocation5 + $0x10] sm:$0xff]   ;;  %v540_v13 = vld [vmem:[#allocation5 + $0x28] sm:$0xff]   ;;  %s443_s16 = sshll.u32 %s701_s15, 4  ;;  %s445_s19 = sshll.u32 %s764_s5, 4  ;;  %s444_s16 = int_to_ptr.vmem [resolvable:$true] %s443_s16  ;;  %s446_s19 = int_to_ptr.hbm [resolvable:$true] %s445_s19 }
  0x16   :  { %v481_v5 = vunpack.c.h.bf16 %v539_v4  ;;  %v82_v8 = vld [vmem:[#allocation2] sm:$0xff]  ;;  %v480_v9 = vunpack.c.l.bf16 %v539_v4  ;;  %v477_v11 = vunpack.c.h.bf16 %v475_v10  ;;  %v476_v12 = vunpack.c.l.bf16 %v475_v10  ;;  %v556_v15 = vld [vmem:[#allocation7] ss:$0 sm:$0xff]  ;;  %v557_v26 = vld [vmem:[#allocation7 + $0x1] ss:$0 sm:$0xff] }
  0x17   :  { %111 = vmatpush.msra.mxu0 %v473_v2  ;;  %v489_v14 = vunpack.c.h.bf16 %v540_v13  ;;  %v488_v20 = vunpack.c.l.bf16 %v540_v13  ;;  %v483_v21 = vld [vmem:[#allocation5 + $0x20] sm:$0xff]   ;;  %v541_v24 = vld [vmem:[#allocation5 + $0x38] sm:$0xff]   ;;  %v491_v32 = vld [vmem:[#allocation5 + $0x30] sm:$0xff]  }
  0x18   :  { %151 = vmatpush.msra.mxu1 %v481_v5  ;;  %v485_v22 = vunpack.c.h.bf16 %v483_v21  ;;  %v484_v23 = vunpack.c.l.bf16 %v483_v21  ;;  %v497_v25 = vunpack.c.h.bf16 %v541_v24  ;;  %v496_v31 = vunpack.c.l.bf16 %v541_v24  ;;  %v542_v35 = vld [vmem:[#allocation5 + $0x48] sm:$0xff]   ;;  %v558_v37 = vld [vmem:[#allocation7 + $0x2] ss:$0 sm:$0xff]  ;;  %v543_v46 = vld [vmem:[#allocation5 + $0x58] sm:$0xff]  }
  0x19   :  { %112 = vmatpush.msra.mxu0 %v472_v3  ;;  %191 = vmatpush.msra.mxu2 %v489_v14  ;;  %v493_v33 = vunpack.c.h.bf16 %v491_v32  ;;  %v492_v34 = vunpack.c.l.bf16 %v491_v32  ;;  %v505_v36 = vunpack.c.h.bf16 %v542_v35  ;;  %v504_v42 = vunpack.c.l.bf16 %v542_v35  ;;  %v499_v43 = vld [vmem:[#allocation5 + $0x40] sm:$0xff]   ;;  %v507_v54 = vld [vmem:[#allocation5 + $0x50] sm:$0xff]   ;;  %v544_v57 = vld [vmem:[#allocation5 + $0x68] sm:$0xff]  }
  0x1a   :  { %152 = vmatpush.msra.mxu1 %v480_v9  ;;  %231 = vmatpush.msra.mxu3 %v497_v25  ;;  %v501_v44 = vunpack.c.h.bf16 %v499_v43  ;;  %v500_v45 = vunpack.c.l.bf16 %v499_v43  ;;  %v513_v47 = vunpack.c.h.bf16 %v543_v46  ;;  %v559_v48 = vld [vmem:[#allocation7 + $0x3] ss:$0 sm:$0xff]  ;;  %v512_v53 = vunpack.c.l.bf16 %v543_v46  ;;  %v560_v59 = vld [vmem:[#allocation7 + $0x4] ss:$0 sm:$0xff]  ;;  %v545_v4 = vld [vmem:[#allocation5 + $0x78] sm:$0xff]  }
  0x1b   :  { %113 = vmatpush.msra.mxu0 %v469_v6  ;;  %192 = vmatpush.msra.mxu2 %v488_v20  ;;  %v509_v55 = vunpack.c.h.bf16 %v507_v54  ;;  %v508_v56 = vunpack.c.l.bf16 %v507_v54  ;;  %v521_v58 = vunpack.c.h.bf16 %v544_v57  ;;  %v520_v0 = vunpack.c.l.bf16 %v544_v57  ;;  %v515_v1 = vld [vmem:[#allocation5 + $0x60] sm:$0xff]  }
  0x1c   :  { %153 = vmatpush.msra.mxu1 %v477_v11  ;;  %232 = vmatpush.msra.mxu3 %v496_v31  ;;  %v517_v2 = vunpack.c.h.bf16 %v515_v1  ;;  %v516_v3 = vunpack.c.l.bf16 %v515_v1  ;;  %v529_v5 = vunpack.c.h.bf16 %v545_v4  ;;  %v561_v6 = vld [vmem:[#allocation7 + $0x5] ss:$0 sm:$0xff]  ;;  %v528_v11 = vunpack.c.l.bf16 %v545_v4  ;;  %v564_v31 = vld [vmem:[%s763_s4] ss:$0 sm:$0xff] }
  0x1d   :  { %114 = vmatpush.msra.mxu0 %v468_v7  ;;  %193 = vmatpush.msra.mxu2 %v485_v22 }
  0x1e   :  { %457 = vmatmul.msk.f32.vlgmr.msra.gmra.mxu0 %vm95_vm0, %v82_v8  ;;  %154 = vmatpush.msra.mxu1 %v476_v12  ;;  %v523_v12 = vld [vmem:[#allocation5 + $0x70] sm:$0xff]  }
  0x1f   :  { %194 = vmatpush.msra.mxu2 %v484_v23  ;;  %233 = vmatpush.msra.mxu3 %v493_v33  ;;  %v525_v13 = vunpack.c.h.bf16 %v523_v12  ;;  %v524_v14 = vunpack.c.l.bf16 %v523_v12  ;;  %v531_v23 = vld [vmem:[#allocation8] sm:$0xff]  }
  0x20   :  { %271 = vmatpush.msrb.mxu0 %v505_v36  ;;  %311 = vmatpush.msrb.mxu1 %v513_v47  ;;  %v533_v24 = vunpack.c.h.bf16 %v531_v23  ;;  %v532_v25 = vunpack.c.l.bf16 %v531_v23 }
  0x21   :  { %234 = vmatpush.msra.mxu3 %v492_v34  ;;  %351 = vmatpush.msrb.mxu2 %v521_v58 }
  0x22   :  { %272 = vmatpush.msrb.mxu0 %v504_v42  ;;  %312 = vmatpush.msrb.mxu1 %v512_v53 }
  0x23   :  { %352 = vmatpush.msrb.mxu2 %v520_v0  ;;  %391 = vmatpush.msrb.mxu3 %v529_v5 }
  0x24   :  { %273 = vmatpush.msrb.mxu0 %v501_v44  ;;  %313 = vmatpush.msrb.mxu1 %v509_v55 }
  0x25   :  { %353 = vmatpush.msrb.mxu2 %v517_v2  ;;  %392 = vmatpush.msrb.mxu3 %v528_v11 }
  0x26   :  { %274 = vmatpush.msrb.mxu0 %v500_v45  ;;  %314 = vmatpush.msrb.mxu1 %v508_v56 }
  0x27   :  { %354 = vmatpush.msrb.mxu2 %v516_v3  ;;  %393 = vmatpush.msrb.mxu3 %v525_v13 }
  0x29   :  { %394 = vmatpush.msrb.mxu3 %v524_v14 }
  0x9b   :  { %v116_v16 = vpop.f32.mrf.mxu0 }
  0x9c   :  { %v117_v17 = vadd.f32 %v556_v15, %v116_v16  ;;  %v546_v15 = vld [vmem:[#allocation8 + $0x8] sm:$0xff]  }
  0x9d   :  { %v537_v16 = vunpack.c.h.bf16 %v546_v15  ;;  %v536_v22 = vunpack.c.l.bf16 %v546_v15 }
  0x9e   :  { %v120_v18 = vmul.f32 0.2, %v117_v17  ;;  %vm119_vm1 = vcmp.gt.f32.partialorder %v117_v17, 0.0 }
  0x9f   :  { %429 = vmatpush.msra.mxu0 %v537_v16 }
  0xa0   :  { %v121_v19 = vsel %vm119_vm1, %v117_v17, %v120_v18  ;;  %v562_v17 = vld [vmem:[#allocation7 + $0x6] ss:$0 sm:$0xff] }
  0xa1   :  { %458 = vmatmul.msk.f32.vlgmr.msra.gmra.mxu1 %vm95_vm0, %v121_v19  ;;  %430 = vmatpush.msra.mxu0 %v536_v22 }
  0xa3   :  { %431 = vmatpush.msra.mxu0 %v533_v24 }
  0xa5   :  { %432 = vmatpush.msra.mxu0 %v532_v25 }
 0x11e   :  { %v156_v27 = vpop.f32.mrf.mxu1 }
 0x11f   :  { %v157_v28 = vadd.f32 %v557_v26, %v156_v27  ;;  %v563_v26 = vld [vmem:[#allocation7 + $0x7] ss:$0 sm:$0xff] }
 0x121   :  { %v160_v29 = vmul.f32 0.2, %v157_v28  ;;  %vm159_vm2 = vcmp.gt.f32.partialorder %v157_v28, 0.0 }
 0x123   :  { %v161_v30 = vsel %vm159_vm2, %v157_v28, %v160_v29 }
 0x124   :  { %459 = vmatmul.msk.f32.vlgmr.msra.gmra.mxu2 %vm95_vm0, %v161_v30 }
 0x1a7   :  { %v196_v38 = vpop.f32.mrf.mxu2 }
 0x1a8   :  { %v197_v39 = vadd.f32 %v558_v37, %v196_v38 }
 0x1aa   :  { %v200_v40 = vmul.f32 0.2, %v197_v39  ;;  %vm199_vm3 = vcmp.gt.f32.partialorder %v197_v39, 0.0 }
 0x1ac   :  { %v201_v41 = vsel %vm199_vm3, %v197_v39, %v200_v40 }
 0x1ad   :  { %460 = vmatmul.msk.f32.vlgmr.msra.gmra.mxu3 %vm95_vm0, %v201_v41 }
 0x230   :  { %v236_v49 = vpop.f32.mrf.mxu3 }
 0x231   :  { %v237_v50 = vadd.f32 %v559_v48, %v236_v49 }
 0x233   :  { %vm239_vm4 = vcmp.gt.f32.partialorder %v237_v50, 0.0  ;;  %v240_v51 = vmul.f32 0.2, %v237_v50 }
 0x235   :  { %v241_v52 = vsel %vm239_vm4, %v237_v50, %v240_v51 }
 0x236   :  { %461 = vmatmul.msk.f32.vlgmr.msrb.gmra.mxu0 %vm95_vm0, %v241_v52 }
 0x2b3   :  { %v276_v60 = vpop.f32.mrf.mxu0 }
 0x2b4   :  { %v277_v61 = vadd.f32 %v560_v59, %v276_v60 }
 0x2b6   :  { %vm279_vm5 = vcmp.gt.f32.partialorder %v277_v61, 0.0  ;;  %v280_v62 = vmul.f32 0.2, %v277_v61 }
 0x2b8   :  { %v281_v63 = vsel %vm279_vm5, %v277_v61, %v280_v62 }
 0x2b9   :  { %462 = vmatmul.msk.f32.vlgmr.msrb.gmra.mxu1 %vm95_vm0, %v281_v63 }
 0x336   :  { %v316_v7 = vpop.f32.mrf.mxu1 }
 0x337   :  { %v317_v8 = vadd.f32 %v561_v6, %v316_v7 }
 0x339   :  { %vm319_vm6 = vcmp.gt.f32.partialorder %v317_v8, 0.0  ;;  %v320_v9 = vmul.f32 0.2, %v317_v8 }
 0x33b   :  { %v321_v10 = vsel %vm319_vm6, %v317_v8, %v320_v9 }
 0x33c   :  { %463 = vmatmul.msk.f32.vlgmr.msrb.gmra.mxu2 %vm95_vm0, %v321_v10 }
 0x3bf   :  { %v356_v18 = vpop.f32.mrf.mxu2 }
 0x3c0   :  { %v357_v19 = vadd.f32 %v562_v17, %v356_v18 }
 0x3c2   :  { %vm359_vm7 = vcmp.gt.f32.partialorder %v357_v19, 0.0  ;;  %v360_v20 = vmul.f32 0.2, %v357_v19 }
 0x3c4   :  { %v361_v21 = vsel %vm359_vm7, %v357_v19, %v360_v20 }
 0x3c5   :  { %464 = vmatmul.msk.f32.vlgmr.msrb.gmra.mxu3 %vm95_vm0, %v361_v21 }
 0x448   :  { %v396_v27 = vpop.f32.mrf.mxu3 }
 0x449   :  { %v397_v28 = vadd.f32 %v563_v26, %v396_v27 }
 0x44b   :  { %vm399_vm8 = vcmp.gt.f32.partialorder %v397_v28, 0.0  ;;  %v400_v29 = vmul.f32 0.2, %v397_v28 }
 0x44d   :  { %v401_v30 = vsel %vm399_vm8, %v397_v28, %v400_v29 }
 0x44e   :  { %465 = vmatmul.msk.f32.vlgmr.msra.gmra.mxu0 %vm95_vm0, %v401_v30 }
 0x4cb   :  { %v434_v32 = vpop.f32.mrf.mxu0 }
 0x4cc   :  { %v435_v33 = vadd.f32 %v564_v31, %v434_v32 }
 0x4ce   :  { %437 = vst [vmem:[#allocation10] sm:$0xff] %v435_v33 }
 0x4cf   :  { %448 = dma.vmem_to_hbm [thread:$0]  %s444_s16, 128, %s446_s19, [#allocation4]  }
 0x4d0   :  { %691 = dma.done.wait [#allocation4], 128  }
 0x4d1   :  { %692 = vsyncadd [#allocation4], 4294967168 }
 0x4d2   :  { %453 = vsyncpa [#allocation3], 1 }
 0x4d3   :  { %454 = vsyncpa [#allocation6], 1 }
 0x4d4   :  { %455 = vsyncpa [#allocation9], 1 }
 0x4d5   :  { %456 = vsyncpa [#allocation4], 1 }

</bundles_post_ra>
